<compile_context>
chip_gen: v6e
topology: v6e:2x2x1
jax: 0.10.0
libtpu: 0.0.40
codegen_flags: <defaults>
</compile_context>

<pallas_src>
import functools

import jax
import jax.numpy as jnp
from jax import lax
from jax.experimental import pallas as pl
from jax.experimental.pallas import tpu as pltpu

LANES = 128       # lane width
SUBLANES = 8      # sublane count (one f32 vreg = (8, 128))
TM_MAX = 8192     # rows per block: (8192, 128) f32 = 4 MiB per input per buffer


def _round_up(x, m):
    return ((x + m - 1) // m) * m


def _num_tensorcores_per_chip():
    """2 TensorCores per device on v7x; 1 on v5e/v6e (and as a safe default)."""
    try:
        kind = jax.devices()[0].device_kind.lower()
    except Exception:  # pragma: no cover - defensive
        return 1
    return 2 if "v7" in kind else 1


def _mse_partial_kernel(p_ref, t_ref, o_ref, acc_ref, *,
                        tm, rows, steps, full_blocks, inv_n, needs_mask):
    c = pl.program_id(0)   # core axis (size 1 on single-TC chips)
    i = pl.program_id(1)   # sequential reduction axis

    @pl.when(i == 0)
    def _init():
        acc_ref[...] = jnp.zeros_like(acc_ref)

    d = p_ref[...].astype(jnp.float32) - t_ref[...].astype(jnp.float32)
    sq = d * d

    if needs_mask:
        gblk = c * steps + i
        is_full = gblk < full_blocks

        # Hot path: complete blocks need no mask (pure VPU vreg adds).
        @pl.when(is_full)
        def _hot():
            acc_ref[...] += sq.reshape(tm // SUBLANES, SUBLANES, LANES).sum(axis=0)

        # Cold path: the ragged last block and fully out-of-range duplicate
        # blocks (clamped index map) are zeroed with a row-id mask.
        @pl.when(jnp.logical_not(is_full))
        def _ragged():
            row_ids = gblk * tm + lax.broadcasted_iota(jnp.int32, (tm, LANES), 0)
            masked = jnp.where(row_ids < rows, sq, 0.0)
            acc_ref[...] += masked.reshape(tm // SUBLANES, SUBLANES, LANES).sum(axis=0)
    else:
        acc_ref[...] += sq.reshape(tm // SUBLANES, SUBLANES, LANES).sum(axis=0)

    @pl.when(i == pl.num_programs(1) - 1)
    def _finalize():
        # Single cross-lane reduce per core; fold the 1/N scale in here.
        val = jnp.sum(acc_ref[...]) * inv_n
        o_ref[...] = jnp.zeros((1, SUBLANES, LANES), jnp.float32) + val


def l2_reg_loss(pred, target):
    """MSE = mean((pred - target)**2) over all elements (nn.MSELoss default)."""
    assert pred.shape == target.shape, "pred/target shape mismatch"
    n = pred.size
    assert n > 0, "empty input"
    inv_n = 1.0 / float(n)

    p = pred.reshape(-1)      # native dtype; cast to f32 happens in-kernel
    t = target.reshape(-1)

    # rows is kept a multiple of 8 so every (tm, 128) block maps exactly onto
    # f32 vregs and the single-vreg accumulator reshape is layout-free.
    rows = (n // LANES) // SUBLANES * SUBLANES
    main = rows * LANES

    # Sub-1024-element tail handled with a tiny plain-JAX sum (avoids padding
    # / concatenating full-size copies of the tensors).
    if main != n:
        tail = jnp.sum((p[main:].astype(jnp.float32)
                        - t[main:].astype(jnp.float32)) ** 2) * inv_n
        p = p[:main]
        t = t[:main]
    else:
        tail = jnp.float32(0.0)

    if rows == 0:
        # Fewer than 1024 elements total: nothing for the kernel to stream.
        return tail

    # int32 row-id mask in the kernel; overflow is theoretical but assert anyway.
    assert rows + 2 * TM_MAX < 2 ** 31, "row-id mask would overflow int32"

    p2 = p.reshape(rows, LANES)
    t2 = t.reshape(rows, LANES)

    # Tile/core selection: split rows across both TensorCores only on v7x and
    # only when there is at least one block per core; otherwise run a single
    # purely sequential reduction axis.
    ncores = _num_tensorcores_per_chip()
    tm = min(TM_MAX, rows)
    if ncores > 1:
        tm = min(TM_MAX, max(SUBLANES, _round_up(pl.cdiv(rows, ncores), SUBLANES)))
        if pl.cdiv(rows, tm) < ncores:
            ncores = 1
            tm = min(TM_MAX, rows)

    total_blocks = pl.cdiv(rows, tm)
    steps = pl.cdiv(total_blocks, ncores)
    full_blocks = rows // tm                       # blocks that need no mask
    needs_mask = (ncores * steps * tm) != rows

    def in_map(c, i):
        # Clamp logically out-of-range block indices (those blocks are fully
        # zeroed by the in-kernel row mask).
        return (jnp.minimum(c * steps + i, total_blocks - 1), 0)

    kernel = functools.partial(
        _mse_partial_kernel, tm=tm, rows=rows, steps=steps,
        full_blocks=full_blocks, inv_n=inv_n, needs_mask=needs_mask)

    if ncores > 1:
        # Guarantee the 2-TC split on v7x; fall back to "parallel" on older jax.
        core_sem = getattr(pltpu, "CORE_PARALLEL", "parallel")
        dim_sem = (core_sem, "arbitrary")
    else:
        dim_sem = ("arbitrary", "arbitrary")

    # 2 inputs x 2 pipeline buffers of (tm, 128) native-dtype tiles + slack.
    vmem_limit = min(
        max(16 << 20, 4 * tm * LANES * p2.dtype.itemsize + (4 << 20)),
        32 << 20)

    partials = pl.pallas_call(
        kernel,
        out_shape=jax.ShapeDtypeStruct((ncores, SUBLANES, LANES), jnp.float32),
        grid_spec=pltpu.PrefetchScalarGridSpec(
            num_scalar_prefetch=0,
            grid=(ncores, steps),
            in_specs=[
                pl.BlockSpec((tm, LANES), in_map),
                pl.BlockSpec((tm, LANES), in_map),
            ],
            # One resident output block per core (accumulator slot along i).
            out_specs=pl.BlockSpec((1, SUBLANES, LANES), lambda c, i: (c, 0, 0)),
            # Single-vreg accumulator.
            scratch_shapes=[pltpu.VMEM((SUBLANES, LANES), jnp.float32)],
        ),
        compiler_params=pltpu.CompilerParams(
            dimension_semantics=dim_sem,
            vmem_limit_bytes=vmem_limit),
    )(p2, t2)

    return jnp.sum(partials[:, 0, 0]) + tail


if __name__ == "__main__":
    key = jax.random.PRNGKey(0)
    k1, k2 = jax.random.split(key)
    # NCHW-shaped example inputs, consistent with a regression head output.
    pred = jax.random.normal(k1, (2, 4, 16, 16), dtype=jnp.float32)
    target = jax.random.normal(k2, (2, 4, 16, 16), dtype=jnp.float32)

    loss = jax.jit(l2_reg_loss)(pred, target)
    loss = jax.block_until_ready(loss)

    # Cross-check against plain-JAX reference (same semantics as nn.MSELoss()).
    ref = jnp.mean((pred - target) ** 2)
    assert jnp.allclose(loss, ref, rtol=1e-6, atol=1e-6), (loss, ref)

    print("KERNEL_OK")
</pallas_src>

<mosaic_0001>
module attributes {stable_mosaic.version = 11 : i64} {
  func.func @_mse_partial_kernel(%arg0: i32, %arg1: i32, %arg2: memref<16x128xf32, #tpu.memory_space<vmem>>, %arg3: memref<16x128xf32, #tpu.memory_space<vmem>>, %arg4: memref<1x8x128xf32, #tpu.memory_space<vmem>>, %arg5: memref<8x128xf32, #tpu.memory_space<vmem>>) attributes {dimension_semantics = [#tpu.dimension_semantics<arbitrary>, #tpu.dimension_semantics<arbitrary>], iteration_bounds = array<i64: 1, 1>, scalar_prefetch = 0 : i64, scratch_operands = 1 : i64, tpu.core_type = #tpu.core_type<tc>, window_params = [{transform_indices = @transform_0, window_bounds = array<i64: 16, 128>}, {transform_indices = @transform_1, window_bounds = array<i64: 16, 128>}, {transform_indices = @transform_2, window_bounds = array<i64: 1, 8, 128>}]} {
    %c0_i32 = arith.constant 0 : i32
    %0 = arith.cmpi eq, %arg1, %c0_i32 : i32
    %1 = arith.extui %0 : i1 to i32
    %c0_i32_0 = arith.constant 0 : i32
    %2 = arith.cmpi ne, %1, %c0_i32_0 : i32
    scf.if %2 {
      %cst_10 = arith.constant 0.000000e+00 : f32
      %15 = vector.broadcast %cst_10 : f32 to vector<8x128xf32>
      %c0_11 = arith.constant 0 : index
      %c0_12 = arith.constant 0 : index
      %16 = vector.load %arg5[%c0_11, %c0_12] : memref<8x128xf32, #tpu.memory_space<vmem>>, vector<8x128xf32>
      tpu.vector_store %arg5[%c0_11, %c0_12], %15 {strides = array<i32>} : memref<8x128xf32, #tpu.memory_space<vmem>>, vector<8x128xf32>,
    } else {
    }
    %c0 = arith.constant 0 : index
    %c0_1 = arith.constant 0 : index
    %3 = vector.load %arg2[%c0, %c0_1] : memref<16x128xf32, #tpu.memory_space<vmem>>, vector<16x128xf32>
    %c0_2 = arith.constant 0 : index
    %c0_3 = arith.constant 0 : index
    %4 = vector.load %arg3[%c0_2, %c0_3] : memref<16x128xf32, #tpu.memory_space<vmem>>, vector<16x128xf32>
    %5 = arith.subf %3, %4 : vector<16x128xf32>
    %6 = arith.mulf %5, %5 : vector<16x128xf32>
    %c0_4 = arith.constant 0 : index
    %c0_5 = arith.constant 0 : index
    %7 = vector.load %arg5[%c0_4, %c0_5] : memref<8x128xf32, #tpu.memory_space<vmem>>, vector<8x128xf32>
    %8 = vector.shape_cast %6 : vector<16x128xf32> to vector<2x8x128xf32>
    %cst = arith.constant dense<0.000000e+00> : vector<8x128xf32>
    %9 = vector.multi_reduction <add>, %8, %cst [0] : vector<2x8x128xf32> to vector<8x128xf32>
    %10 = arith.addf %7, %9 : vector<8x128xf32>
    %c0_6 = arith.constant 0 : index
    %c0_7 = arith.constant 0 : index
    %11 = vector.load %arg5[%c0_6, %c0_7] : memref<8x128xf32, #tpu.memory_space<vmem>>, vector<8x128xf32>
    tpu.vector_store %arg5[%c0_6, %c0_7], %10 {strides = array<i32>} : memref<8x128xf32, #tpu.memory_space<vmem>>, vector<8x128xf32>,
    %c0_i32_8 = arith.constant 0 : i32
    %12 = arith.cmpi eq, %arg1, %c0_i32_8 : i32
    %13 = arith.extui %12 : i1 to i32
    %c0_i32_9 = arith.constant 0 : i32
    %14 = arith.cmpi ne, %13, %c0_i32_9 : i32
    scf.if %14 {
      %c0_10 = arith.constant 0 : index
      %c0_11 = arith.constant 0 : index
      %15 = vector.load %arg5[%c0_10, %c0_11] : memref<8x128xf32, #tpu.memory_space<vmem>>, vector<8x128xf32>
      %16 = vector.shape_cast %15 : vector<8x128xf32> to vector<1x8x128xf32>
      %cst_12 = arith.constant dense<0.000000e+00> : vector<1xf32>
      %17 = vector.multi_reduction <add>, %16, %cst_12 [1, 2] : vector<1x8x128xf32> to vector<1xf32>
      %18 = vector.shape_cast %17 : vector<1xf32> to vector<1x1x1xf32>
      %19 = vector.extract %18[0, 0, 0] : f32 from vector<1x1x1xf32>
      %cst_13 = arith.constant 4.8828125E-4 : f32
      %20 = arith.mulf %19, %cst_13 : f32
      %cst_14 = arith.constant 0.000000e+00 : f32
      %21 = vector.broadcast %cst_14 : f32 to vector<1x8x128xf32>
      %22 = vector.broadcast %20 : f32 to vector<1x8x128xf32>
      %23 = arith.addf %21, %22 : vector<1x8x128xf32>
      %c0_15 = arith.constant 0 : index
      %c0_16 = arith.constant 0 : index
      %c0_17 = arith.constant 0 : index
      %24 = vector.load %arg4[%c0_15, %c0_16, %c0_17] : memref<1x8x128xf32, #tpu.memory_space<vmem>>, vector<1x8x128xf32>
      tpu.vector_store %arg4[%c0_15, %c0_16, %c0_17], %23 {strides = array<i32>} : memref<1x8x128xf32, #tpu.memory_space<vmem>>, vector<1x8x128xf32>,
    } else {
    }
    return
  }
  func.func @transform_0(%arg0: i32, %arg1: i32) -> (i32, i32) {
    %c1_i32 = arith.constant 1 : i32
    %0 = arith.muli %arg0, %c1_i32 : i32
    %1 = arith.addi %0, %arg1 : i32
    %c0_i32 = arith.constant 0 : i32
    %2 = arith.minsi %1, %c0_i32 : i32
    %c0_i32_0 = arith.constant 0 : i32
    %c0_i32_1 = arith.constant 0 : i32
    return %2, %c0_i32_0 : i32, i32
  }
  func.func @transform_1(%arg0: i32, %arg1: i32) -> (i32, i32) {
    %c1_i32 = arith.constant 1 : i32
    %0 = arith.muli %arg0, %c1_i32 : i32
    %1 = arith.addi %0, %arg1 : i32
    %c0_i32 = arith.constant 0 : i32
    %2 = arith.minsi %1, %c0_i32 : i32
    %c0_i32_0 = arith.constant 0 : i32
    %c0_i32_1 = arith.constant 0 : i32
    return %2, %c0_i32_0 : i32, i32
  }
  func.func @transform_2(%arg0: i32, %arg1: i32) -> (i32, i32, i32) {
    %c0_i32 = arith.constant 0 : i32
    %c0_i32_0 = arith.constant 0 : i32
    %c0_i32_1 = arith.constant 0 : i32
    return %arg0, %c0_i32, %c0_i32_0 : i32, i32, i32
  }
}

</mosaic_0001>

<bundles_post_ra>
// kernel: l2_reg_loss.1
= control target key start
LH: loop header
LB: loop body
LE: loop exit
PB: predicated region body
PF: predicated region fallthrough
CT: control target
= control target key end

     0   :  { %s157_s0 = inlined_call_operand.vmem [shape: f32[16,128], index: 0, kind: input, shape index: {}]   ;;  %s158_s1 = inlined_call_operand.vmem [shape: f32[16,128], index: 1, kind: input, shape index: {}]   ;;  %s159_s2 = inlined_call_operand.vmem [shape: f32[1,8,128], index: 2, kind: output, shape index: {}]  }
   0x1   :  { %v80_v0 = vld [vmem:[%s157_s0] sm:$0xff]  ;;  %v81_v1 = vld [vmem:[%s157_s0 + $0x8] sm:$0xff] }
   0x2   :  { %v82_v2 = vld [vmem:[%s158_s1] sm:$0xff]  ;;  %v83_v3 = vld [vmem:[%s158_s1 + $0x8] sm:$0xff] }
   0x3   :  { %v84_v4 = vsub.f32 %v80_v0, %v82_v2  ;;  %v85_v5 = vsub.f32 %v81_v1, %v83_v3 }
   0x5   :  { %v86_v6 = vmul.f32 %v84_v4, %v84_v4  ;;  %v87_v7 = vmul.f32 %v85_v5, %v85_v5 }
   0x7   :  { %v89_v8 = vadd.f32 %v87_v7, %v86_v6 }
   0x9   :  { %96 = vadd.xlane.f32.xlu0 %v89_v8 }
  0x92   :  { %v97_v9 = vpop.xlane.xlu0 %96 }
  0x93   :  { %v98_v10 = vrot.slane %v97_v9, 4 }
  0x95   :  { %v99_v11 = vadd.f32 %v98_v10, %v97_v9 }
  0x97   :  { %v100_v12 = vrot.slane %v99_v11, 2 }
  0x99   :  { %v101_v13 = vadd.f32 %v100_v12, %v99_v11 }
  0x9b   :  { %v102_v14 = vrot.slane %v101_v13, 1 }
  0x9d   :  { %v103_v15 = vadd.f32 %v102_v14, %v101_v13 }
  0x9f   :  { %125 = vpush %v103_v15 }
  0xd0   :  { %s126_s0 = spop %125 }
  0xd1   :  { %s105_s17 = smul.f32 0.00048828125, %s126_s0 }
  0xd3   :  { %v106_v16 = vstv %s105_s17 }
  0xd4   :  { %108 = vst [vmem:[%s159_s2] sm:$0xff] %v106_v16 }

</bundles_post_ra>
